<compile_context>
chip_gen: v6e
topology: v6e:2x2x1
jax: 0.10.0
libtpu: 0.0.40
codegen_flags: <defaults>
</compile_context>

<pallas_src>
import functools

import jax
import jax.numpy as jnp
from jax.experimental import pallas as pl
from jax.experimental.pallas import tpu as pltpu


_LANE = 128
_MIB = 1024 * 1024
# Ceiling on one (C, H*W) input slab (in input-dtype bytes) for the
# single-pass path.  With 2x-in + 2x-out double buffering plus the fp32
# working set this stays well under v7x's 64 MiB physical VMEM per core.
_SINGLE_PASS_SLAB_BYTES = 6 * _MIB
# Target size for one (C, T_HW) tile in the two-pass path.
_TWO_PASS_TILE_BYTES = 2 * _MIB


def _round_up(x, m):
    return (x + m - 1) // m * m


def _vmem_limit(buffer_bytes):
    # Explicit scoped-VMEM request: requested buffers + headroom, clamped to
    # [32 MiB, 64 MiB] (64 MiB = v7x physical VMEM per TensorCore).
    return int(min(64 * _MIB, max(32 * _MIB, buffer_bytes + 4 * _MIB)))


# --------------------------------------------------------------- single pass
def _gct_single_kernel(x_ref, o_ref, *, c, eps, hw):
    # x_ref / o_ref: (C, HW) -- one batch element (batch dim squeezed).
    x = x_ref[...]
    chn = x.shape[0]
    # Per-channel global average pool: lane reduction with fp32 accumulation
    # (no full-slab fp32 copy of x is materialized).
    y = jnp.sum(x, axis=1, keepdims=True, dtype=jnp.float32) * (1.0 / hw)   # (C, 1)
    mean = jnp.sum(y, axis=0, keepdims=True) * (1.0 / chn)                  # (1, 1)
    mean_x2 = jnp.sum(y * y, axis=0, keepdims=True) * (1.0 / chn)           # (1, 1)
    var = mean_x2 - mean * mean
    y_norm = (y - mean) * jax.lax.rsqrt(var + eps)                          # (C, 1)
    gate = jnp.exp(-(y_norm * y_norm) * (0.5 * c))                          # (C, 1), EUP exp
    o_ref[...] = (x * gate).astype(o_ref.dtype)


def _gct_single_pass(x_flat, c, eps):
    n, chn, hw = x_flat.shape
    dtype_bytes = x_flat.dtype.itemsize
    slab_bytes = chn * hw * dtype_bytes
    kernel = functools.partial(_gct_single_kernel, c=c, eps=eps, hw=float(hw))
    return pl.pallas_call(
        kernel,
        out_shape=jax.ShapeDtypeStruct((n, chn, hw), x_flat.dtype),
        grid_spec=pltpu.PrefetchScalarGridSpec(
            num_scalar_prefetch=0,
            grid=(n,),
            in_specs=[pl.BlockSpec((pl.Squeezed(), chn, hw), lambda i: (i, 0, 0))],
            out_specs=pl.BlockSpec((pl.Squeezed(), chn, hw), lambda i: (i, 0, 0)),
        ),
        compiler_params=pltpu.CompilerParams(
            dimension_semantics=("parallel",),
            vmem_limit_bytes=_vmem_limit(4 * slab_bytes + 2 * chn * hw * 4)),
        cost_estimate=pl.CostEstimate(
            flops=3 * n * chn * hw,
            transcendentals=n * chn,
            bytes_accessed=2 * n * chn * hw * dtype_bytes),
    )(x_flat)


# ----------------------------------------------------- two pass: reduce/apply
def _gct_pool_kernel(x_ref, sum_ref):
    # x_ref: (C, T) spatial tile; sum_ref: (C, 1) fp32 accumulator that stays
    # resident across all spatial tiles of this batch element.
    @pl.when(pl.program_id(1) == 0)
    def _():
        sum_ref[...] = jnp.zeros_like(sum_ref)
    sum_ref[...] += jnp.sum(x_ref[...], axis=1, keepdims=True, dtype=jnp.float32)


def _gct_apply_kernel(gate_ref, x_ref, o_ref):
    # gate_ref: (C, 1) fp32 per-channel gate; x_ref / o_ref: (C, T) tile.
    o_ref[...] = (x_ref[...] * gate_ref[...]).astype(o_ref.dtype)


def _choose_lane_tile(hw_pad, chn, dtype_bytes):
    for t in (4096, 2048, 1024, 512, 256, 128):
        if hw_pad % t == 0 and chn * t * dtype_bytes <= _TWO_PASS_TILE_BYTES:
            return t
    # TODO(synk): also tile over C if C*128*dtype ever exceeds the VMEM budget.
    return _LANE  # always divides hw_pad (hw_pad is a multiple of 128)


def _gct_two_pass(x_flat, c, eps):
    n, chn, hw = x_flat.shape
    dtype_bytes = x_flat.dtype.itemsize

    hw_pad = _round_up(hw, _LANE)
    x_p = x_flat
    if hw_pad != hw:
        # TODO(synk): mask the last partial tile in-kernel instead of zero-
        # padding (the pad costs extra HBM traffic for non-128-multiple H*W).
        x_p = jnp.pad(x_flat, ((0, 0), (0, 0), (0, hw_pad - hw)))

    t = _choose_lane_tile(hw_pad, chn, dtype_bytes)
    n_hw = hw_pad // t
    tile_bytes = chn * t * dtype_bytes

    # ---- pass 1: per-channel spatial sums ----------------------------------
    sums = pl.pallas_call(
        _gct_pool_kernel,
        out_shape=jax.ShapeDtypeStruct((n, chn, 1), jnp.float32),
        grid_spec=pltpu.PrefetchScalarGridSpec(
            num_scalar_prefetch=0,
            grid=(n, n_hw),
            in_specs=[pl.BlockSpec((pl.Squeezed(), chn, t), lambda i, j: (i, 0, j))],
            out_specs=pl.BlockSpec((pl.Squeezed(), chn, 1), lambda i, j: (i, 0, 0)),
        ),
        compiler_params=pltpu.CompilerParams(
            dimension_semantics=("parallel", "arbitrary"),
            vmem_limit_bytes=_vmem_limit(2 * tile_bytes + chn * t * 4)),
        cost_estimate=pl.CostEstimate(
            flops=n * chn * hw_pad,
            transcendentals=0,
            bytes_accessed=n * chn * hw_pad * dtype_bytes + n * chn * 4),
    )(x_p)

    # ---- gate math on the tiny (N, C, 1) vector: plain JAX -----------------
    y = sums * (1.0 / hw)                            # true HW (padding is zeros)
    mean = jnp.mean(y, axis=1, keepdims=True)
    mean_x2 = jnp.mean(y * y, axis=1, keepdims=True)
    var = mean_x2 - mean * mean
    y_norm = (y - mean) * jax.lax.rsqrt(var + eps)
    gate = jnp.exp(-(y_norm * y_norm) * (0.5 * c))   # (N, C, 1) fp32

    # ---- pass 2: apply the per-channel gate ---------------------------------
    out_p = pl.pallas_call(
        _gct_apply_kernel,
        out_shape=jax.ShapeDtypeStruct((n, chn, hw_pad), x_flat.dtype),
        grid_spec=pltpu.PrefetchScalarGridSpec(
            num_scalar_prefetch=0,
            grid=(n, n_hw),
            in_specs=[
                pl.BlockSpec((pl.Squeezed(), chn, 1), lambda i, j: (i, 0, 0)),
                pl.BlockSpec((pl.Squeezed(), chn, t), lambda i, j: (i, 0, j)),
            ],
            out_specs=pl.BlockSpec((pl.Squeezed(), chn, t), lambda i, j: (i, 0, j)),
        ),
        compiler_params=pltpu.CompilerParams(
            dimension_semantics=("parallel", "parallel"),
            vmem_limit_bytes=_vmem_limit(4 * tile_bytes + 2 * chn * t * 4)),
        cost_estimate=pl.CostEstimate(
            flops=n * chn * hw_pad,
            transcendentals=0,
            bytes_accessed=2 * n * chn * hw_pad * dtype_bytes + n * chn * 4),
    )(gate, x_p)

    if hw_pad != hw:
        out_p = out_p[:, :, :hw]
    return out_p


# ----------------------------------------------------------------- dispatcher
def gct_forward(x_nchw, c=2.0, eps=1e-5, force_two_pass=False):
    """GCT.forward: x * exp(-(normalized global-avg-pool)^2 / 2 * c). NCHW in/out."""
    n, chn, h, w = x_nchw.shape
    hw = h * w
    x_flat = x_nchw.reshape(n, chn, hw)          # pure reshape, no data movement
    slab_bytes = chn * hw * x_nchw.dtype.itemsize
    if force_two_pass or slab_bytes > _SINGLE_PASS_SLAB_BYTES:
        out_flat = _gct_two_pass(x_flat, float(c), float(eps))
    else:
        out_flat = _gct_single_pass(x_flat, float(c), float(eps))
    return out_flat.reshape(n, chn, h, w)


def _reference(x, c=2.0, eps=1e-5):
    """Pure-JAX reference mirroring the PyTorch module."""
    y = jnp.mean(x, axis=(2, 3), keepdims=True)
    mean = jnp.mean(y, axis=1, keepdims=True)
    mean_x2 = jnp.mean(y ** 2, axis=1, keepdims=True)
    var = mean_x2 - mean ** 2
    y_norm = (y - mean) / jnp.sqrt(var + eps)
    return x * jnp.exp(-(y_norm ** 2 / 2 * c))


if __name__ == "__main__":
    key = jax.random.PRNGKey(0)

    # Small shape consistent with the module -> single-pass path.
    n, chn, h, w = 2, 4, 16, 16
    x = jax.random.normal(key, (n, chn, h, w), dtype=jnp.float32)
    out = jax.block_until_ready(gct_forward(x, c=2.0, eps=1e-5))
    ref = _reference(x, c=2.0, eps=1e-5)
    assert out.shape == (n, chn, h, w)
    assert jnp.allclose(out, ref, atol=1e-4, rtol=1e-4), "single-pass mismatch"

    # Same input through the tiled reduce-then-apply path.
    out2 = jax.block_until_ready(gct_forward(x, c=2.0, eps=1e-5, force_two_pass=True))
    assert jnp.allclose(out2, ref, atol=1e-4, rtol=1e-4), "two-pass mismatch"

    # Non-128-multiple spatial size (7x7 = 49 lanes) through the two-pass path.
    x3 = jax.random.normal(jax.random.PRNGKey(0), (2, 8, 7, 7), dtype=jnp.float32)
    out3 = jax.block_until_ready(gct_forward(x3, c=2.0, eps=1e-5, force_two_pass=True))
    ref3 = _reference(x3, c=2.0, eps=1e-5)
    assert jnp.allclose(out3, ref3, atol=1e-4, rtol=1e-4), "padded two-pass mismatch"

    print("KERNEL_OK")
</pallas_src>

<mosaic_0001>
module attributes {stable_mosaic.version = 11 : i64} {
  func.func @_gct_single_kernel(%arg0: i32, %arg1: memref<1x4x256xf32, #tpu.memory_space<vmem>>, %arg2: memref<1x4x256xf32, #tpu.memory_space<vmem>>) attributes {dimension_semantics = [#tpu.dimension_semantics<parallel>], iteration_bounds = array<i64: 2>, scalar_prefetch = 0 : i64, scratch_operands = 0 : i64, tpu.core_type = #tpu.core_type<tc>, window_params = [{transform_indices = @transform_0, window_bounds = array<i64: 1, 4, 256>}, {transform_indices = @transform_1, window_bounds = array<i64: 1, 4, 256>}]} {
    %c0 = arith.constant 0 : index
    %c0_0 = arith.constant 0 : index
    %c0_1 = arith.constant 0 : index
    %0 = vector.load %arg1[%c0, %c0_0, %c0_1] : memref<1x4x256xf32, #tpu.memory_space<vmem>>, vector<1x4x256xf32>
    %1 = vector.shape_cast %0 : vector<1x4x256xf32> to vector<4x256xf32>
    %cst = arith.constant dense<0.000000e+00> : vector<4xf32>
    %2 = vector.multi_reduction <add>, %1, %cst [1] : vector<4x256xf32> to vector<4xf32>
    %3 = vector.shape_cast %2 : vector<4xf32> to vector<4x1xf32>
    %cst_2 = arith.constant 3.906250e-03 : f32
    %4 = vector.broadcast %cst_2 : f32 to vector<4x1xf32>
    %5 = arith.mulf %3, %4 : vector<4x1xf32>
    %cst_3 = arith.constant dense<0.000000e+00> : vector<1xf32>
    %6 = vector.multi_reduction <add>, %5, %cst_3 [0] : vector<4x1xf32> to vector<1xf32>
    %7 = vector.shape_cast %6 : vector<1xf32> to vector<1x1xf32>
    %cst_4 = arith.constant 2.500000e-01 : f32
    %8 = vector.broadcast %cst_4 : f32 to vector<1x1xf32>
    %9 = arith.mulf %7, %8 : vector<1x1xf32>
    %10 = arith.mulf %5, %5 : vector<4x1xf32>
    %cst_5 = arith.constant dense<0.000000e+00> : vector<1xf32>
    %11 = vector.multi_reduction <add>, %10, %cst_5 [0] : vector<4x1xf32> to vector<1xf32>
    %12 = vector.shape_cast %11 : vector<1xf32> to vector<1x1xf32>
    %cst_6 = arith.constant 2.500000e-01 : f32
    %13 = vector.broadcast %cst_6 : f32 to vector<1x1xf32>
    %14 = arith.mulf %12, %13 : vector<1x1xf32>
    %15 = arith.mulf %9, %9 : vector<1x1xf32>
    %16 = arith.subf %14, %15 : vector<1x1xf32>
    %17 = vector.broadcast %9 : vector<1x1xf32> to vector<4x1xf32>
    %18 = arith.subf %5, %17 : vector<4x1xf32>
    %cst_7 = arith.constant 9.99999974E-6 : f32
    %19 = vector.broadcast %cst_7 : f32 to vector<1x1xf32>
    %20 = arith.addf %16, %19 : vector<1x1xf32>
    %21 = math.rsqrt %20 : vector<1x1xf32>
    %22 = vector.broadcast %21 : vector<1x1xf32> to vector<4x1xf32>
    %23 = arith.mulf %18, %22 : vector<4x1xf32>
    %24 = arith.mulf %23, %23 : vector<4x1xf32>
    %cst_8 = arith.constant 0.000000e+00 : f32
    %25 = vector.broadcast %cst_8 : f32 to vector<4x1xf32>
    %26 = arith.subf %25, %24 : vector<4x1xf32>
    %cst_9 = arith.constant 1.000000e+00 : f32
    %27 = vector.broadcast %cst_9 : f32 to vector<4x1xf32>
    %28 = arith.mulf %26, %27 : vector<4x1xf32>
    %29 = math.exp %28 : vector<4x1xf32>
    %30 = vector.broadcast %29 : vector<4x1xf32> to vector<4x256xf32>
    %31 = arith.mulf %1, %30 : vector<4x256xf32>
    %c0_10 = arith.constant 0 : index
    %c0_11 = arith.constant 0 : index
    %c0_12 = arith.constant 0 : index
    %32 = vector.load %arg2[%c0_10, %c0_11, %c0_12] : memref<1x4x256xf32, #tpu.memory_space<vmem>>, vector<1x4x256xf32>
    %33 = vector.shape_cast %32 : vector<1x4x256xf32> to vector<4x256xf32>
    %34 = vector.shape_cast %31 : vector<4x256xf32> to vector<1x4x256xf32>
    tpu.vector_store %arg2[%c0_10, %c0_11, %c0_12], %34 {strides = array<i32>} : memref<1x4x256xf32, #tpu.memory_space<vmem>>, vector<1x4x256xf32>,
    return
  }
  func.func @transform_0(%arg0: i32) -> (i32, i32, i32) {
    %c0_i32 = arith.constant 0 : i32
    %c0_i32_0 = arith.constant 0 : i32
    %c0_i32_1 = arith.constant 0 : i32
    return %arg0, %c0_i32, %c0_i32_0 : i32, i32, i32
  }
  func.func @transform_1(%arg0: i32) -> (i32, i32, i32) {
    %c0_i32 = arith.constant 0 : i32
    %c0_i32_0 = arith.constant 0 : i32
    %c0_i32_1 = arith.constant 0 : i32
    return %arg0, %c0_i32, %c0_i32_0 : i32, i32, i32
  }
}

</mosaic_0001>

<bundles_post_ra>
// kernel: tpu_custom_call.1
= control target key start
LH: loop header
LB: loop body
LE: loop exit
PB: predicated region body
PF: predicated region fallthrough
CT: control target
= control target key end

     0   :  { %6 = vsyncpa [#allocation3], 0  ;;  %s587_s0 = inlined_call_operand.hbm [shape: f32[2,4,256], index: 0, kind: input, shape index: {}]   ;;  %s588_s1 = inlined_call_operand.hbm [shape: f32[2,4,256], index: 1, kind: output, shape index: {}]  }
   0x1   :  { %8 = vsyncpa [#allocation3 + $0x1], 0 }
   0x2   :  { %9 = vsyncpa [#allocation4], 0 }
   0x3   :  { %11 = vsyncpa [#allocation4 + $0x1], 0  ;;  %s442_s6 = smov 0   ;;  %s444_s7 = smov 0  }
   0x4   :  { %s446_s8 = smov 0   ;;  %s448_s9 = smov 0  }
   0x5 LB: > { %s463_s10 = sadd.s32 4294967295, %s427_s9   ;;  %s267_s11 = sadd.s32 4294967294, %s427_s9   ;;  %s427_s9 = sphi %s448_s9, %s605_s9   ;;  %s423_s8 = sphi %s446_s8, %s604_s8   ;;  %s419_s7 = sphi %s444_s7, %s603_s7   ;;  %s415_s6 = sphi %s442_s6, %s602_s6  }
   0x6   : > { %s467_s12 = sadd.s32 1, %s427_s9   ;;  %s24_s13 = sadd.s32 1, %s423_s8 }
   0x7   : > { %s21_s14 = ssub.s32 %s427_s9, %s467_s12  ;;  %p31_p0 = scmp.ne.s32.totalorder %s423_s8, %s419_s7 }
   0x8   : > { %p22_p1 = scmp.eq.s32.totalorder %s21_s14, 0  ;;  %p32_p2 = scmp.eq.s32.totalorder %s427_s9, 0 }
   0x9   : > { %p37_p3 = scmp.ne.s32.totalorder %s419_s7, %s415_s6  ;;  %p38_p4 = scmp.eq.s32.totalorder %s463_s10, 0 }
   0xa   : > { %s479_s15 = scalar_select %p22_p1, %s423_s8, %s24_s13  }
   0xb   : > { %p481_p5 = por %p32_p2, %p31_p0  ;;  %p485_p6 = por %p38_p4, %p37_p3 }
   0xc   : > { %p61_p7 = scmp.eq.s32.totalorder %s463_s10, 1  ;;  %p67_p8 = scmp.eq.s32.totalorder %s267_s11, 1 }
   0xd   : > { %s592_s17 = scalar_select %p485_p6, 1, 0 }
   0xe   : > { %p295_p10 = scmp.lt.s32.totalorder %s427_s9, 2  ;;  %p492_p11 = por %p61_p7, %p31_p0 }
   0xf   : > { %p496_p12 = por %p67_p8, %p37_p3  ;;  %s87_s20 = sand.u32 1, %s423_s8  }
  0x10   : > { %s593_s18 = scalar_select %p492_p11, 1, 0 }
  0x11   : > { %s594_s19 = scalar_select %p496_p12, 1, 0 }
  0x12   : > { %s281_s21 = sshll.u32 %s427_s9, 7  ;;  %s270_s22 = sshll.u32 %s87_s20, 3 }
  0x13   : > { %s505_s25 = scalar_lea.hbm %s587_s0, %s281_s21  ;;  %s91_s26 = scalar_lea.vmem [#allocation2], %s270_s22 }
  0x14   : > { %s99_s27 = sshll.u32 %s91_s26, 4  ;;  %p509_p13 = pnand %p295_p10, %p481_p5  ;;  %s513_s27 = int_to_ptr.vmem [resolvable:$true] %s99_s27 }
  0x15   : > { %s88_s29 = scalar_lea.sflag [#allocation3], %s87_s20  ;;  %s335_s30 = scalar_lea.hbm %s505_s25, 128 }
  0x16   : > { %p336_p2 = scmp.ne.s32.totalorder %s505_s25, %s335_s30  ;;  %p337_p3 = pneg %p509_p13 }
  0x17   : > { %s340_s4 = scalar_lea.hbm %s587_s0, 256  ;;  %p341_p5 = scmp.lt.s32.totalorder %s505_s25, %s587_s0 }
  0x18   : > { %p338_p4 = pnand %p337_p3, %p336_p2  ;;  %p342_p8 = scmp.lt.s32.totalorder %s340_s4, %s335_s30 }
  0x1a   : > { %p339_p7 = pneg %p338_p4  ;;  %p343_p10 = por %p342_p8, %p341_p5 }
  0x1c   : > { %p344_p9 = pnand %p343_p10, %p339_p7 }
  0x1e   : > { %347 = shalt.err (!%p344_p9)
}
  0x1f   : > { %s348_s13 = scalar_lea.vmem %s513_s27, 128  ;;  %s429_s14 = smov [#allocation2]  }
  0x20   : > { %p349_p0 = scmp.ne.s32.totalorder %s513_s27, %s348_s13  ;;  %s353_s16 = sshll.u32 %s429_s14, 4  ;;  %s354_s16 = int_to_ptr.vmem [resolvable:$false] %s353_s16 }
  0x21   : > { %s355_s20 = scalar_lea.vmem %s354_s16, 256  ;;  %p356_p4 = scmp.lt.s32.totalorder %s513_s27, %s354_s16 }
  0x22   : > { %p351_p1 = pnand %p349_p0, %p337_p3  ;;  %p357_p12 = scmp.lt.s32.totalorder %s355_s20, %s348_s13 }
  0x24   : > { %p352_p2 = pneg %p351_p1  ;;  %p358_p11 = por %p357_p12, %p356_p4 }
  0x26   : > { %p359_p6 = pnand %p358_p11, %p352_p2 }
  0x28   : > { %362 = shalt.err (!%p359_p6)
}
  0x29   : > { %290 = dma.hbm_to_vmem [thread:$0]  (!%p509_p13), %s505_s25, 128, %s513_s27, %s88_s29  }
  0x2a   : > { %p596_p9 = scmp.lt.s32.totalorder %s427_s9, 3  ;;  %p597_p7 = scmp.ge.s32.totalorder %s427_s9, 1 }
  0x2c   : > { %p105_p0 = pnand %p597_p7, %p596_p9 }
  0x2d   : > { %s540_s21 = sand.u32 (!%p105_p0), 1, %s419_s7   ;;  %p598_p6 = scmp.ne.s32.totalorder (!%p105_p0), %s592_s17, 0 }
  0x2e   : > { %108 = sbr.rel (%p105_p0) target bundleno = 272 (0x110), region = 24  ;;  %s274_s22 = sshll.u32 (!%p105_p0), %s540_s21, 3 }
  0x2f   : > { %s111_s23 = scalar_lea.sflag (!%p105_p0), [#allocation3], %s540_s21  ;;  %s114_s24 = scalar_lea.vmem (!%p105_p0), [#allocation2], %s274_s22 }
  0x33   : > { %406 = dma.done.wait (%p598_p6), %s111_s23, 128  }
  0x34   : > { %408 = vsyncadd (%p598_p6), %s111_s23, 4294967168  ;;  %vm137_vm0 = vcmask 1043456   ;;  %v133_v0 = vld [vmem:[%s114_s24] sm:$0xff]  ;;  %v430_v33 = vmov 839922192   ;;  %v175_v35 = vlaneseq  ;;  %s282_s17 = sshll.u32 %s463_s10, 7 }
  0x35   : > { %v135_v1 = vcombine.high %v133_v0, %v133_v0  ;;  %v138_v2 = vsel %vm137_vm0, %v133_v0, 0.0  ;;  %v173_v34 = vunpack.c.l.s4 %v430_v33  ;;  %s132_s25 = scalar_lea.vmem [#allocation5], %s274_s22  ;;  %s195_s29 = scalar_lea.hbm %s588_s1, %s282_s17 }
  0x36   : > { %v176_v37 = vshrl.u32 %v175_v35, 7  ;;  %s197_s26 = sshll.u32 %s132_s25, 4  ;;  %s183_s30 = scalar_lea.sflag [#allocation4], %s540_s21  ;;  %s198_s26 = int_to_ptr.vmem [resolvable:$true] %s197_s26 }
  0x37   : > { %v139_v3 = vsel %vm137_vm0, %v135_v1, 0.0  ;;  %v174_v36 = vunpack.c.0.s8 %v173_v34  ;;  %s363_s2 = scalar_lea.vmem %s198_s26, 128  ;;  %p599_p12 = scmp.ne.s32.totalorder %s593_s18, 0 }
  0x38   : > { %v140_v4 = vadd.f32 %v139_v3, %v138_v2  ;;  %p364_p11 = scmp.ne.s32.totalorder %s198_s26, %s363_s2  ;;  %s431_s3 = smov [#allocation5]  }
  0x39   : > { %v177_v38 = vsub.s32 %v174_v36, %v176_v37  ;;  %s367_s4 = sshll.u32 %s431_s3, 4  ;;  %s368_s4 = int_to_ptr.vmem [resolvable:$false] %s367_s4 }
  0x3a   : > { %141 = vadd.xlane.f32.xlu0 %v140_v4  ;;  %p365_p13 = pnand %p364_p11, %p599_p12  ;;  %s369_s10 = scalar_lea.vmem %s368_s4, 256 }
  0x3b   : > { %p370_p3 = scmp.lt.s32.totalorder %s198_s26, %s368_s4  ;;  %p371_p5 = scmp.lt.s32.totalorder %s369_s10, %s363_s2 }
  0x3c   : > { %p366_p1 = pneg %p365_p13 }
  0x3d   : > { %p372_p8 = por %p371_p5, %p370_p3 }
  0x3f   : > { %p373_p10 = pnand %p372_p8, %p366_p1 }
  0xc3   : > { %v142_v5 = vpop.xlane.xlu0 %141 }
  0xc4   : > { %v143_v6 = vmul.f32 0.00390625, %v142_v5 }
  0xc6   : > { %v144_v7 = vsel %vm137_vm0, %v143_v6, 0.0  ;;  %v152_v8 = vmul.f32 %v143_v6, %v143_v6 }
  0xc7   : > { %v145_v9 = vrot.slane %v144_v7, 4 }
  0xc8   : > { %v153_v10 = vsel %vm137_vm0, %v152_v8, 0.0 }
  0xc9   : > { %v146_v11 = vadd.f32 %v145_v9, %v144_v7  ;;  %v154_v12 = vrot.slane %v153_v10, 4 }
  0xcb   : > { %v147_v13 = vrot.slane %v146_v11, 2  ;;  %v155_v14 = vadd.f32 %v154_v12, %v153_v10 }
  0xcd   : > { %v148_v15 = vadd.f32 %v147_v13, %v146_v11  ;;  %v156_v16 = vrot.slane %v155_v14, 2 }
  0xcf   : > { %v149_v17 = vrot.slane %v148_v15, 1  ;;  %v157_v18 = vadd.f32 %v156_v16, %v155_v14 }
  0xd1   : > { %v150_v19 = vadd.f32 %v149_v17, %v148_v15  ;;  %v158_v20 = vrot.slane %v157_v18, 1 }
  0xd3   : > { %v151_v21 = vmul.f32 0.25, %v150_v19  ;;  %v159_v22 = vadd.f32 %v158_v20, %v157_v18 }
  0xd5   : > { %v160_v23 = vmul.f32 0.25, %v159_v22  ;;  %v161_v24 = vmul.f32 %v151_v21, %v151_v21  ;;  %v163_v27 = vsub.f32 %v143_v6, %v151_v21 }
  0xd7   : > { %v162_v25 = vsub.f32 %v160_v23, %v161_v24 }
  0xd9   : > { %v164_v26 = vadd.f32 1e-05, %v162_v25 }
  0xdb   : > { %331 = vrsqrt.f32 %v164_v26 }
  0xe8   : > { %v332_v28 = vpop.eup %331 }
  0xe9   : > { %v166_v29 = vmul.f32 %v332_v28, %v163_v27 }
  0xeb   : > { %v167_v30 = vmul.f32 %v166_v29, %v166_v29 }
  0xed   : > { %v168_v31 = vsub.f32 0.0, %v167_v30 }
  0xef   : > { %v169_v32 = vmul.f32 1.442695, %v168_v31 }
  0xf1   : > { %333 = vpow2.f32 %v169_v32 }
  0xfe   : > { %v334_v39 = vpop.eup %333 }
  0xff   : > { %v178_v40 = vrot.slane %v334_v39, %v177_v38 }
 0x101   : > { %v180_v41 = vmul.f32 %v178_v40, %v133_v0 }
 0x103   : > { %181 = vst [vmem:[%s132_s25] sm:$0xff] %v180_v41 }
 0x104   : > { %376 = shalt.err (!%p373_p10)
}
 0x105   : > { %s377_s5 = scalar_lea.hbm %s195_s29, 128  ;;  %s381_s14 = scalar_lea.hbm %s588_s1, 256 }
 0x106   : > { %p378_p2 = scmp.ne.s32.totalorder %s195_s29, %s377_s5  ;;  %p382_p7 = scmp.lt.s32.totalorder %s195_s29, %s588_s1 }
 0x107   : > { %p383_p0 = scmp.lt.s32.totalorder %s381_s14, %s377_s5 }
 0x108   : > { %p379_p4 = pnand %p378_p2, %p599_p12 }
 0x109   : > { %p384_p6 = por %p383_p0, %p382_p7 }
 0x10a   : > { %p380_p9 = pneg %p379_p4 }
 0x10c   : > { %p385_p11 = pnand %p384_p6, %p380_p9 }
 0x10e   : > { %388 = shalt.err (!%p385_p11)
}
 0x10f   : > { %285 = dma.vmem_to_hbm [thread:$0]  (%p599_p12), %s198_s26, 128, %s195_s29, %s183_s30  }
 0x110 PF: > { %s209_s21 = sand.u32 1, %s415_s6   ;;  %p600_p13 = scmp.ne.s32.totalorder %s594_s19, 0 }
 0x111   : > { %p601_p1 = scmp.ge.s32.totalorder %s427_s9, 2  ;;  %s210_s22 = scalar_lea.sflag [#allocation4], %s209_s21 }
 0x113   : > { %p292_p3 = pnand %p601_p1, %p600_p13 }
 0x115   : > { %p293_p5 = pneg %p292_p3 }
 0x117   : > { %410 = dma.done.wait (%p293_p5), %s210_s22, 128  }
 0x118   : > { %412 = vsyncadd (%p293_p5), %s210_s22, 4294967168  ;;  %p14_p8 = scmp.ge.s32.totalorder %s467_s12, 4   ;;  %s602_s6 = smov %s419_s7 }
 0x119   : > { %s603_s7 = smov %s423_s8  ;;  %s604_s8 = smov %s479_s15 }
 0x11a   : > { %s605_s9 = smov %s467_s12  ;;  %16 = sbr.rel (!%p14_p8) target bundleno = 5 (0x5), region = 69 }
 0x11f   :  { %215 = vsyncpa [#allocation3], 1 }
 0x120   :  { %217 = vsyncpa [#allocation3 + $0x1], 1 }
 0x121   :  { %218 = vsyncpa [#allocation4], 1 }
 0x122   :  { %220 = vsyncpa [#allocation4 + $0x1], 1 }

</bundles_post_ra>
